<compile_context>
chip_gen: v7x
topology: tpu7x:2x2x1
jax: 0.10.0
libtpu: 0.0.40
codegen_flags: <defaults>
</compile_context>

<pallas_src>
import functools

import jax
import jax.numpy as jnp
from jax import lax
from jax.experimental import pallas as pl
from jax.experimental.pallas import tpu as pltpu


def _round_up(x, m):
    return ((x + m - 1) // m) * m


def _row_tile(m, cap):
    """Largest multiple-of-8 divisor of m that is <= cap (m is a mult. of 8)."""
    if m <= cap:
        return m
    d = (cap // 8) * 8
    while m % d:
        d -= 8
    return d


def _time_block(seq_len, cap):
    """Largest divisor of seq_len that is <= cap."""
    d = min(cap, seq_len)
    while seq_len % d:
        d -= 1
    return d


# ---------------------------------------------------------------------------
# Kernel 1: fused Elman layer.
#   Per grid step (one block of t_blk timesteps):
#     pre[t] = x[t] @ W_ih^T + (b_ih + b_hh)   -- one (t_blk*B, in) MXU matmul
#     h_t    = tanh(pre[t] + h_{t-1} @ W_hh^T) -- serial, bf16 carry
#   The bf16 hidden carry lives in hlast_ref (constant output index map ->
#   VMEM-resident across the sequential 'arbitrary' time axis; it also is the
#   final-hidden output).  Do NOT flip the time axis to 'parallel'.
# ---------------------------------------------------------------------------
def _rnn_layer_kernel(h0_ref, x_ref, wih_ref, bias_ref, whh_ref,
                      out_ref, hlast_ref, pre_ref, *, unroll):
    t_blk, b, in_pad = x_ref.shape
    h_pad = whh_ref.shape[-1]

    @pl.when(pl.program_id(0) == 0)
    def _():
        hlast_ref[...] = h0_ref[...]          # bf16 carry init

    # Time-parallel input projection for this whole block (fused; no HBM
    # round-trip of `pre`).  Accumulate in f32, keep f32 in VMEM scratch.
    x2d = x_ref[...].reshape(t_blk * b, in_pad)
    pre = jnp.dot(x2d, wih_ref[...], preferred_element_type=jnp.float32)
    pre_ref[...] = (pre + bias_ref[...]).reshape(t_blk, b, h_pad)

    whh = whh_ref[...]                        # bf16, resident

    def body(i, h_bf16):
        h_new = jnp.tanh(
            pre_ref[i]
            + jnp.dot(h_bf16, whh, preferred_element_type=jnp.float32))
        h_bf16 = h_new.astype(jnp.bfloat16)   # single cast: store + next dot
        out_ref[i] = h_bf16                   # lane-dense (B_pad, H_pad) store
        return h_bf16

    h_final = lax.fori_loop(0, t_blk, body, hlast_ref[...], unroll=unroll)
    hlast_ref[...] = h_final                  # one carry store per grid step


def rnn_layer(x, h0_bf16, w_ih_t, bias, w_hh_t, *, t_block=64, unroll=8):
    seq_len, b, in_pad = x.shape
    h_pad = w_hh_t.shape[-1]
    t_blk = _time_block(seq_len, t_block)
    cost = pl.CostEstimate(
        flops=2 * seq_len * b * (in_pad * h_pad + h_pad * h_pad),
        transcendentals=seq_len * b * h_pad,
        bytes_accessed=(2 * seq_len * b * (in_pad + h_pad)
                        + 2 * (in_pad * h_pad + h_pad * h_pad)
                        + 4 * h_pad + 4 * b * h_pad))
    out, h_last = pl.pallas_call(
        functools.partial(_rnn_layer_kernel, unroll=min(unroll, t_blk)),
        grid=(seq_len // t_blk,),
        in_specs=[
            pl.BlockSpec((b, h_pad), lambda t: (0, 0)),             # h0
            pl.BlockSpec((t_blk, b, in_pad), lambda t: (t, 0, 0)),  # x
            pl.BlockSpec((in_pad, h_pad), lambda t: (0, 0)),        # W_ih^T
            pl.BlockSpec((1, h_pad), lambda t: (0, 0)),             # bias
            pl.BlockSpec((h_pad, h_pad), lambda t: (0, 0)),         # W_hh^T
        ],
        out_specs=[
            pl.BlockSpec((t_blk, b, h_pad), lambda t: (t, 0, 0)),   # outputs
            pl.BlockSpec((b, h_pad), lambda t: (0, 0)),             # h carry
        ],
        out_shape=[
            jax.ShapeDtypeStruct((seq_len, b, h_pad), jnp.bfloat16),
            jax.ShapeDtypeStruct((b, h_pad), jnp.bfloat16),
        ],
        scratch_shapes=[pltpu.VMEM((t_blk, b, h_pad), jnp.float32)],  # pre
        compiler_params=pltpu.CompilerParams(
            dimension_semantics=("arbitrary",)),   # sequential recurrence
        cost_estimate=cost,
    )(h0_bf16, x, w_ih_t, bias, w_hh_t)
    return out, h_last


# ---------------------------------------------------------------------------
# Kernel 2: pooling Linear(n_hidden -> vocab) + log_softmax, row-tiled.
# bf16 activations/weights on the MXU, f32 logits/softmax.  Padded vocab
# columns carry a -1e30 f32 bias so they vanish in the softmax.
# ---------------------------------------------------------------------------
def _pool_logsoftmax_kernel(x_ref, w_ref, b_ref, out_ref):
    logits = (jnp.dot(x_ref[...], w_ref[...],
                      preferred_element_type=jnp.float32)
              + b_ref[...])
    m = jnp.max(logits, axis=-1, keepdims=True)
    z = logits - m
    # TODO(synk): on v6e/v7x cast z to bf16 before exp (EUP bf16 ~2x); keep
    #             f32 on v5e (no bf16 EUP path).
    lse = jnp.log(jnp.sum(jnp.exp(z), axis=-1, keepdims=True))
    out_ref[...] = z - lse


def pool_log_softmax(x_flat, w_pool_bf16, b_pool, *, row_tile=512):
    m, k = x_flat.shape
    v = w_pool_bf16.shape[-1]
    tm = _row_tile(m, row_tile)
    cost = pl.CostEstimate(
        flops=2 * m * k * v,
        transcendentals=m * v,
        bytes_accessed=2 * m * k + 2 * k * v + 4 * v + 4 * m * v)
    # TODO(synk): for realistic vocab sizes, tile the vocab axis (two-pass /
    #             online log-softmax), single-buffer the weight block and set
    #             vmem_limit_bytes (binds first on v7x 64 MiB / v5e 16 MiB).
    return pl.pallas_call(
        _pool_logsoftmax_kernel,
        grid=(m // tm,),
        in_specs=[
            pl.BlockSpec((tm, k), lambda i: (i, 0)),
            pl.BlockSpec((k, v), lambda i: (0, 0)),
            pl.BlockSpec((1, v), lambda i: (0, 0)),
        ],
        out_specs=pl.BlockSpec((tm, v), lambda i: (i, 0)),
        out_shape=jax.ShapeDtypeStruct((m, v), jnp.float32),
        compiler_params=pltpu.CompilerParams(
            dimension_semantics=("parallel",)),
        cost_estimate=cost,
    )(x_flat, w_pool_bf16, b_pool)


# ---------------------------------------------------------------------------
# Parameter init (mirrors RNNModel.__init__/init_weights).  Returns both the
# raw f32 params (for the pure-JAX reference) and the padded / transposed /
# bf16 kernel params.
# ---------------------------------------------------------------------------
def init_params(key, vocab_size, emb_dim, n_hidden, n_layers):
    initrange = 0.1
    k_rnn = 1.0 / float(n_hidden) ** 0.5
    e_pad = _round_up(emb_dim, 128)
    h_pad = _round_up(n_hidden, 128)
    v_pad = _round_up(vocab_size, 128)
    keys = jax.random.split(key, 2 + 4 * n_layers)

    emb = jax.random.uniform(keys[0], (vocab_size, emb_dim), jnp.float32,
                             -initrange, initrange)
    w_pool = jax.random.uniform(keys[1], (vocab_size, n_hidden), jnp.float32,
                                -initrange, initrange)
    b_pool_raw = jnp.zeros((vocab_size,), jnp.float32)          # init zeros
    b_pool = jnp.full((1, v_pad), -1e30, jnp.float32)           # pad mask
    b_pool = b_pool.at[0, :vocab_size].set(b_pool_raw)

    raw = {"embedding": emb, "w_pool": w_pool, "b_pool": b_pool_raw}
    params = {
        # bf16 embedding table: gather + HBM stream stays bf16.
        "embedding": jnp.pad(
            emb, ((0, 0), (0, e_pad - emb_dim))).astype(jnp.bfloat16),
        "w_pool_t": jnp.pad(
            w_pool.T, ((0, h_pad - n_hidden), (0, v_pad - vocab_size))
        ).astype(jnp.bfloat16),
        "b_pool": b_pool,                                        # f32 (mask!)
    }
    for layer in range(n_layers):
        in_dim = emb_dim if layer == 0 else n_hidden
        in_pad = e_pad if layer == 0 else h_pad
        k0, k1, k2, k3 = keys[2 + 4 * layer: 6 + 4 * layer]
        w_ih = jax.random.uniform(k0, (n_hidden, in_dim), jnp.float32,
                                  -k_rnn, k_rnn)
        w_hh = jax.random.uniform(k1, (n_hidden, n_hidden), jnp.float32,
                                  -k_rnn, k_rnn)
        b_ih = jax.random.uniform(k2, (n_hidden,), jnp.float32, -k_rnn, k_rnn)
        b_hh = jax.random.uniform(k3, (n_hidden,), jnp.float32, -k_rnn, k_rnn)
        raw[f"w_ih_{layer}"] = w_ih
        raw[f"w_hh_{layer}"] = w_hh
        raw[f"b_ih_{layer}"] = b_ih
        raw[f"b_hh_{layer}"] = b_hh
        params[f"w_ih_t_{layer}"] = jnp.pad(
            w_ih.T, ((0, in_pad - in_dim), (0, h_pad - n_hidden))
        ).astype(jnp.bfloat16)
        params[f"w_hh_t_{layer}"] = jnp.pad(
            w_hh.T, ((0, h_pad - n_hidden), (0, h_pad - n_hidden))
        ).astype(jnp.bfloat16)
        params[f"bias_{layer}"] = jnp.pad(
            (b_ih + b_hh).reshape(1, n_hidden),
            ((0, 0), (0, h_pad - n_hidden)))                    # f32
    return params, raw


# ---------------------------------------------------------------------------
# Full forward: bf16 embedding gather (XLA glue) -> per-layer fused
# projection+recurrence kernel -> pooling Linear + log_softmax kernel.
# ---------------------------------------------------------------------------
@functools.partial(jax.jit, static_argnames=("vocab_size", "n_hidden"))
def rnn_model_forward(params, tokens, hidden, *, vocab_size, n_hidden):
    n_layers, batch, _ = hidden.shape
    seq_len = tokens.shape[0]
    b_pad = _round_up(batch, 8)
    h_pad = params["w_hh_t_0"].shape[-1]

    # dropout = identity (eval).  bf16 gather, pad batch once.
    emb = params["embedding"][tokens]                      # (seq, batch, E_pad) bf16
    x = jnp.pad(emb, ((0, 0), (0, b_pad - batch), (0, 0)))
    hidden_b = jnp.pad(
        hidden, ((0, 0), (0, b_pad - batch), (0, h_pad - n_hidden))
    ).astype(jnp.bfloat16)

    h_finals = []
    for layer in range(n_layers):
        x, h_last = rnn_layer(x, hidden_b[layer],
                              params[f"w_ih_t_{layer}"],
                              params[f"bias_{layer}"],
                              params[f"w_hh_t_{layer}"])
        h_finals.append(h_last)

    hidden_out = (jnp.stack(h_finals, axis=0).astype(jnp.float32)
                  [:, :batch, :n_hidden])

    flat = x.reshape(seq_len * b_pad, h_pad)               # bf16
    logp_pad = pool_log_softmax(flat, params["w_pool_t"], params["b_pool"])
    v_pad = logp_pad.shape[-1]
    log_probs = (logp_pad.reshape(seq_len, b_pad, v_pad)
                 [:, :batch, :vocab_size]
                 .reshape(seq_len * batch, vocab_size))
    return log_probs, hidden_out


# ---------------------------------------------------------------------------
# Pure-JAX f32 reference (mirrors the PyTorch forward) for tolerance checks.
# ---------------------------------------------------------------------------
def reference_forward(raw, tokens, hidden, n_layers):
    x = raw["embedding"][tokens]                           # (seq, batch, E)
    hs = []
    for layer in range(n_layers):
        w_ih, w_hh = raw[f"w_ih_{layer}"], raw[f"w_hh_{layer}"]
        b = raw[f"b_ih_{layer}"] + raw[f"b_hh_{layer}"]
        h = hidden[layer]
        outs = []
        for t in range(x.shape[0]):
            h = jnp.tanh(x[t] @ w_ih.T + h @ w_hh.T + b)
            outs.append(h)
        x = jnp.stack(outs, axis=0)
        hs.append(h)
    logits = x.reshape(-1, x.shape[-1]) @ raw["w_pool"].T + raw["b_pool"]
    return jax.nn.log_softmax(logits, axis=-1), jnp.stack(hs, axis=0)


if __name__ == "__main__":
    vocab_size = 50
    emb_dim = 16
    n_hidden = 32
    n_layers = 2
    seq_len = 8
    batch = 2

    root = jax.random.PRNGKey(0)
    k_params, k_tok = jax.random.split(root)
    params, raw = init_params(k_params, vocab_size, emb_dim, n_hidden, n_layers)

    tokens = jax.random.randint(k_tok, (seq_len, batch), 0, vocab_size,
                                dtype=jnp.int32)
    hidden0 = jnp.zeros((n_layers, batch, n_hidden), jnp.float32)  # init_hidden

    log_probs, hidden_out = rnn_model_forward(
        params, tokens, hidden0, vocab_size=vocab_size, n_hidden=n_hidden)
    jax.block_until_ready((log_probs, hidden_out))

    assert log_probs.shape == (seq_len * batch, vocab_size)
    assert hidden_out.shape == (n_layers, batch, n_hidden)
    assert bool(jnp.all(jnp.isfinite(log_probs)))
    assert bool(jnp.all(jnp.isfinite(hidden_out)))

    # Tolerance check vs. pure-JAX f32 reference (bf16 weights/activations).
    ref_lp, ref_h = reference_forward(raw, tokens, hidden0, n_layers)
    lp_err = float(jnp.max(jnp.abs(log_probs - ref_lp)))
    h_err = float(jnp.max(jnp.abs(hidden_out - ref_h)))
    assert lp_err < 1e-1, f"log_prob max abs err {lp_err}"
    assert h_err < 1e-1, f"hidden max abs err {h_err}"

    print("KERNEL_OK")
</pallas_src>

<mosaic_0001>
module attributes {stable_mosaic.version = 11 : i64} {
  func.func @_pool_logsoftmax_kernel(%arg0: i32, %arg1: memref<64x128xbf16, #tpu.memory_space<vmem>>, %arg2: memref<128x128xbf16, #tpu.memory_space<vmem>>, %arg3: memref<1x128xf32, #tpu.memory_space<vmem>>, %arg4: memref<64x128xf32, #tpu.memory_space<vmem>>) attributes {dimension_semantics = [#tpu.dimension_semantics<parallel>], iteration_bounds = array<i64: 1>, scalar_prefetch = 0 : i64, scratch_operands = 0 : i64, tpu.core_type = #tpu.core_type<tc>, window_params = [{transform_indices = @transform_0, window_bounds = array<i64: 64, 128>}, {pipeline_mode = #tpu.pipeline_mode<synchronous>, transform_indices = @transform_1, window_bounds = array<i64: 128, 128>}, {pipeline_mode = #tpu.pipeline_mode<synchronous>, transform_indices = @transform_2, window_bounds = array<i64: 1, 128>}, {transform_indices = @transform_3, window_bounds = array<i64: 64, 128>}]} {
    %c0 = arith.constant 0 : index
    %c0_0 = arith.constant 0 : index
    %0 = vector.load %arg1[%c0, %c0_0] : memref<64x128xbf16, #tpu.memory_space<vmem>>, vector<64x128xbf16>
    %c0_1 = arith.constant 0 : index
    %c0_2 = arith.constant 0 : index
    %1 = vector.load %arg2[%c0_1, %c0_2] : memref<128x128xbf16, #tpu.memory_space<vmem>>, vector<128x128xbf16>
    %cst = arith.constant dense<0.000000e+00> : vector<64x128xf32>
    %2 = tpu.matmul %0, %1, %cst {dimension_numbers = #tpu.dot_dimension_numbers<[1], [0], [0], [1], [0, 0, 1, 1], [], []>} : vector<64x128xbf16>, vector<128x128xbf16>, vector<64x128xf32> -> vector<64x128xf32>
    %c0_3 = arith.constant 0 : index
    %c0_4 = arith.constant 0 : index
    %3 = vector.load %arg3[%c0_3, %c0_4] : memref<1x128xf32, #tpu.memory_space<vmem>>, vector<1x128xf32>
    %4 = vector.broadcast %3 : vector<1x128xf32> to vector<64x128xf32>
    %5 = arith.addf %2, %4 : vector<64x128xf32>
    %cst_5 = arith.constant dense<0xFF800000> : vector<64xf32>
    %6 = vector.multi_reduction <maximumf>, %5, %cst_5 [1] : vector<64x128xf32> to vector<64xf32>
    %7 = vector.shape_cast %6 : vector<64xf32> to vector<64x1xf32>
    %8 = vector.broadcast %7 : vector<64x1xf32> to vector<64x128xf32>
    %9 = arith.subf %5, %8 : vector<64x128xf32>
    %10 = math.exp %9 : vector<64x128xf32>
    %cst_6 = arith.constant dense<0.000000e+00> : vector<64xf32>
    %11 = vector.multi_reduction <add>, %10, %cst_6 [1] : vector<64x128xf32> to vector<64xf32>
    %12 = vector.shape_cast %11 : vector<64xf32> to vector<64x1xf32>
    %13 = math.log %12 : vector<64x1xf32>
    %14 = vector.broadcast %13 : vector<64x1xf32> to vector<64x128xf32>
    %15 = arith.subf %9, %14 : vector<64x128xf32>
    %c0_7 = arith.constant 0 : index
    %c0_8 = arith.constant 0 : index
    %16 = vector.load %arg4[%c0_7, %c0_8] : memref<64x128xf32, #tpu.memory_space<vmem>>, vector<64x128xf32>
    tpu.vector_store %arg4[%c0_7, %c0_8], %15 {strides = array<i32>} : memref<64x128xf32, #tpu.memory_space<vmem>>, vector<64x128xf32>,
    return
  }
  func.func @transform_0(%arg0: i32) -> (i32, i32) {
    %c0_i32 = arith.constant 0 : i32
    %c0_i32_0 = arith.constant 0 : i32
    return %arg0, %c0_i32 : i32, i32
  }
  func.func @transform_1(%arg0: i32) -> (i32, i32) {
    %c0_i32 = arith.constant 0 : i32
    %c0_i32_0 = arith.constant 0 : i32
    %c0_i32_1 = arith.constant 0 : i32
    return %c0_i32, %c0_i32_0 : i32, i32
  }
  func.func @transform_2(%arg0: i32) -> (i32, i32) {
    %c0_i32 = arith.constant 0 : i32
    %c0_i32_0 = arith.constant 0 : i32
    %c0_i32_1 = arith.constant 0 : i32
    return %c0_i32, %c0_i32_0 : i32, i32
  }
  func.func @transform_3(%arg0: i32) -> (i32, i32) {
    %c0_i32 = arith.constant 0 : i32
    %c0_i32_0 = arith.constant 0 : i32
    return %arg0, %c0_i32 : i32, i32
  }
}

module attributes {stable_mosaic.version = 11 : i64} {
  func.func @_rnn_layer_kernel(%arg0: i32, %arg1: memref<8x128xbf16, #tpu.memory_space<vmem>>, %arg2: memref<8x8x128xbf16, #tpu.memory_space<vmem>>, %arg3: memref<128x128xbf16, #tpu.memory_space<vmem>>, %arg4: memref<1x128xf32, #tpu.memory_space<vmem>>, %arg5: memref<128x128xbf16, #tpu.memory_space<vmem>>, %arg6: memref<8x8x128xbf16, #tpu.memory_space<vmem>>, %arg7: memref<8x128xbf16, #tpu.memory_space<vmem>>, %arg8: memref<8x8x128xf32, #tpu.memory_space<vmem>>) attributes {dimension_semantics = [#tpu.dimension_semantics<arbitrary>], iteration_bounds = array<i64: 1>, scalar_prefetch = 0 : i64, scratch_operands = 1 : i64, tpu.core_type = #tpu.core_type<tc>, window_params = [{pipeline_mode = #tpu.pipeline_mode<synchronous>, transform_indices = @transform_0, window_bounds = array<i64: 8, 128>}, {transform_indices = @transform_1, window_bounds = array<i64: 8, 8, 128>}, {pipeline_mode = #tpu.pipeline_mode<synchronous>, transform_indices = @transform_2, window_bounds = array<i64: 128, 128>}, {pipeline_mode = #tpu.pipeline_mode<synchronous>, transform_indices = @transform_3, window_bounds = array<i64: 1, 128>}, {pipeline_mode = #tpu.pipeline_mode<synchronous>, transform_indices = @transform_4, window_bounds = array<i64: 128, 128>}, {transform_indices = @transform_5, window_bounds = array<i64: 8, 8, 128>}, {pipeline_mode = #tpu.pipeline_mode<synchronous>, transform_indices = @transform_6, window_bounds = array<i64: 8, 128>}]} {
    %c0_i32 = arith.constant 0 : i32
    %0 = arith.cmpi eq, %arg0, %c0_i32 : i32
    %1 = arith.extui %0 : i1 to i32
    %c0_i32_0 = arith.constant 0 : i32
    %2 = arith.cmpi ne, %1, %c0_i32_0 : i32
    scf.if %2 {
      %c0_57 = arith.constant 0 : index
      %c0_58 = arith.constant 0 : index
      %103 = vector.load %arg1[%c0_57, %c0_58] : memref<8x128xbf16, #tpu.memory_space<vmem>>, vector<8x128xbf16>
      %c0_59 = arith.constant 0 : index
      %c0_60 = arith.constant 0 : index
      %104 = vector.load %arg7[%c0_59, %c0_60] : memref<8x128xbf16, #tpu.memory_space<vmem>>, vector<8x128xbf16>
      tpu.vector_store %arg7[%c0_59, %c0_60], %103 {strides = array<i32>} : memref<8x128xbf16, #tpu.memory_space<vmem>>, vector<8x128xbf16>,
    } else {
    }
    %c0 = arith.constant 0 : index
    %c0_1 = arith.constant 0 : index
    %c0_2 = arith.constant 0 : index
    %3 = vector.load %arg2[%c0, %c0_1, %c0_2] : memref<8x8x128xbf16, #tpu.memory_space<vmem>>, vector<8x8x128xbf16>
    %4 = vector.shape_cast %3 : vector<8x8x128xbf16> to vector<64x128xbf16>
    %c0_3 = arith.constant 0 : index
    %c0_4 = arith.constant 0 : index
    %5 = vector.load %arg3[%c0_3, %c0_4] : memref<128x128xbf16, #tpu.memory_space<vmem>>, vector<128x128xbf16>
    %cst = arith.constant dense<0.000000e+00> : vector<64x128xf32>
    %6 = tpu.matmul %4, %5, %cst {dimension_numbers = #tpu.dot_dimension_numbers<[1], [0], [0], [1], [0, 0, 1, 1], [], []>} : vector<64x128xbf16>, vector<128x128xbf16>, vector<64x128xf32> -> vector<64x128xf32>
    %c0_5 = arith.constant 0 : index
    %c0_6 = arith.constant 0 : index
    %7 = vector.load %arg4[%c0_5, %c0_6] : memref<1x128xf32, #tpu.memory_space<vmem>>, vector<1x128xf32>
    %8 = vector.broadcast %7 : vector<1x128xf32> to vector<64x128xf32>
    %9 = arith.addf %6, %8 : vector<64x128xf32>
    %10 = vector.shape_cast %9 : vector<64x128xf32> to vector<8x8x128xf32>
    %c0_7 = arith.constant 0 : index
    %c0_8 = arith.constant 0 : index
    %c0_9 = arith.constant 0 : index
    %11 = vector.load %arg8[%c0_7, %c0_8, %c0_9] : memref<8x8x128xf32, #tpu.memory_space<vmem>>, vector<8x8x128xf32>
    tpu.vector_store %arg8[%c0_7, %c0_8, %c0_9], %10 {strides = array<i32>} : memref<8x8x128xf32, #tpu.memory_space<vmem>>, vector<8x8x128xf32>,
    %c0_10 = arith.constant 0 : index
    %c0_11 = arith.constant 0 : index
    %12 = vector.load %arg5[%c0_10, %c0_11] : memref<128x128xbf16, #tpu.memory_space<vmem>>, vector<128x128xbf16>
    %c0_12 = arith.constant 0 : index
    %c0_13 = arith.constant 0 : index
    %13 = vector.load %arg7[%c0_12, %c0_13] : memref<8x128xbf16, #tpu.memory_space<vmem>>, vector<8x128xbf16>
    %c0_i32_14 = arith.constant 0 : i32
    %14 = arith.index_cast %c0_i32_14 : i32 to index
    %c0_15 = arith.constant 0 : index
    %c0_16 = arith.constant 0 : index
    %15 = vector.load %arg8[%14, %c0_15, %c0_16] : memref<8x8x128xf32, #tpu.memory_space<vmem>>, vector<1x8x128xf32>
    %16 = vector.shape_cast %15 : vector<1x8x128xf32> to vector<8x128xf32>
    %cst_17 = arith.constant dense<0.000000e+00> : vector<8x128xf32>
    %17 = tpu.matmul %13, %12, %cst_17 {dimension_numbers = #tpu.dot_dimension_numbers<[1], [0], [0], [1], [0, 0, 1, 1], [], []>} : vector<8x128xbf16>, vector<128x128xbf16>, vector<8x128xf32> -> vector<8x128xf32>
    %18 = arith.addf %16, %17 : vector<8x128xf32>
    %19 = math.tanh %18 : vector<8x128xf32>
    %20 = arith.truncf %19 : vector<8x128xf32> to vector<8x128xbf16>
    %21 = arith.index_cast %c0_i32_14 : i32 to index
    %c0_18 = arith.constant 0 : index
    %c0_19 = arith.constant 0 : index
    %22 = vector.load %arg6[%21, %c0_18, %c0_19] : memref<8x8x128xbf16, #tpu.memory_space<vmem>>, vector<1x8x128xbf16>
    %23 = vector.shape_cast %22 : vector<1x8x128xbf16> to vector<8x128xbf16>
    %24 = vector.shape_cast %20 : vector<8x128xbf16> to vector<1x8x128xbf16>
    tpu.vector_store %arg6[%21, %c0_18, %c0_19], %24 {strides = array<i32>} : memref<8x8x128xbf16, #tpu.memory_space<vmem>>, vector<1x8x128xbf16>,
    %c1_i32 = arith.constant 1 : i32
    %25 = arith.index_cast %c1_i32 : i32 to index
    %c0_20 = arith.constant 0 : index
    %c0_21 = arith.constant 0 : index
    %26 = vector.load %arg8[%25, %c0_20, %c0_21] : memref<8x8x128xf32, #tpu.memory_space<vmem>>, vector<1x8x128xf32>
    %27 = vector.shape_cast %26 : vector<1x8x128xf32> to vector<8x128xf32>
    %cst_22 = arith.constant dense<0.000000e+00> : vector<8x128xf32>
    %28 = tpu.matmul %20, %12, %cst_22 {dimension_numbers = #tpu.dot_dimension_numbers<[1], [0], [0], [1], [0, 0, 1, 1], [], []>} : vector<8x128xbf16>, vector<128x128xbf16>, vector<8x128xf32> -> vector<8x128xf32>
    %29 = arith.addf %27, %28 : vector<8x128xf32>
    %30 = math.tanh %29 : vector<8x128xf32>
    %31 = arith.truncf %30 : vector<8x128xf32> to vector<8x128xbf16>
    %32 = arith.index_cast %c1_i32 : i32 to index
    %c0_23 = arith.constant 0 : index
    %c0_24 = arith.constant 0 : index
    %33 = vector.load %arg6[%32, %c0_23, %c0_24] : memref<8x8x128xbf16, #tpu.memory_space<vmem>>, vector<1x8x128xbf16>
    %34 = vector.shape_cast %33 : vector<1x8x128xbf16> to vector<8x128xbf16>
    %35 = vector.shape_cast %31 : vector<8x128xbf16> to vector<1x8x128xbf16>
    tpu.vector_store %arg6[%32, %c0_23, %c0_24], %35 {strides = array<i32>} : memref<8x8x128xbf16, #tpu.memory_space<vmem>>, vector<1x8x128xbf16>,
    %c2_i32 = arith.constant 2 : i32
    %36 = arith.index_cast %c2_i32 : i32 to index
    %c0_25 = arith.constant 0 : index
    %c0_26 = arith.constant 0 : index
    %37 = vector.load %arg8[%36, %c0_25, %c0_26] : memref<8x8x128xf32, #tpu.memory_space<vmem>>, vector<1x8x128xf32>
    %38 = vector.shape_cast %37 : vector<1x8x128xf32> to vector<8x128xf32>
    %cst_27 = arith.constant dense<0.000000e+00> : vector<8x128xf32>
    %39 = tpu.matmul %31, %12, %cst_27 {dimension_numbers = #tpu.dot_dimension_numbers<[1], [0], [0], [1], [0, 0, 1, 1], [], []>} : vector<8x128xbf16>, vector<128x128xbf16>, vector<8x128xf32> -> vector<8x128xf32>
    %40 = arith.addf %38, %39 : vector<8x128xf32>
    %41 = math.tanh %40 : vector<8x128xf32>
    %42 = arith.truncf %41 : vector<8x128xf32> to vector<8x128xbf16>
    %43 = arith.index_cast %c2_i32 : i32 to index
    %c0_28 = arith.constant 0 : index
    %c0_29 = arith.constant 0 : index
    %44 = vector.load %arg6[%43, %c0_28, %c0_29] : memref<8x8x128xbf16, #tpu.memory_space<vmem>>, vector<1x8x128xbf16>
    %45 = vector.shape_cast %44 : vector<1x8x128xbf16> to vector<8x128xbf16>
    %46 = vector.shape_cast %42 : vector<8x128xbf16> to vector<1x8x128xbf16>
    tpu.vector_store %arg6[%43, %c0_28, %c0_29], %46 {strides = array<i32>} : memref<8x8x128xbf16, #tpu.memory_space<vmem>>, vector<1x8x128xbf16>,
    %c3_i32 = arith.constant 3 : i32
    %47 = arith.index_cast %c3_i32 : i32 to index
    %c0_30 = arith.constant 0 : index
    %c0_31 = arith.constant 0 : index
    %48 = vector.load %arg8[%47, %c0_30, %c0_31] : memref<8x8x128xf32, #tpu.memory_space<vmem>>, vector<1x8x128xf32>
    %49 = vector.shape_cast %48 : vector<1x8x128xf32> to vector<8x128xf32>
    %cst_32 = arith.constant dense<0.000000e+00> : vector<8x128xf32>
    %50 = tpu.matmul %42, %12, %cst_32 {dimension_numbers = #tpu.dot_dimension_numbers<[1], [0], [0], [1], [0, 0, 1, 1], [], []>} : vector<8x128xbf16>, vector<128x128xbf16>, vector<8x128xf32> -> vector<8x128xf32>
    %51 = arith.addf %49, %50 : vector<8x128xf32>
    %52 = math.tanh %51 : vector<8x128xf32>
    %53 = arith.truncf %52 : vector<8x128xf32> to vector<8x128xbf16>
    %54 = arith.index_cast %c3_i32 : i32 to index
    %c0_33 = arith.constant 0 : index
    %c0_34 = arith.constant 0 : index
    %55 = vector.load %arg6[%54, %c0_33, %c0_34] : memref<8x8x128xbf16, #tpu.memory_space<vmem>>, vector<1x8x128xbf16>
    %56 = vector.shape_cast %55 : vector<1x8x128xbf16> to vector<8x128xbf16>
    %57 = vector.shape_cast %53 : vector<8x128xbf16> to vector<1x8x128xbf16>
    tpu.vector_store %arg6[%54, %c0_33, %c0_34], %57 {strides = array<i32>} : memref<8x8x128xbf16, #tpu.memory_space<vmem>>, vector<1x8x128xbf16>,
    %c4_i32 = arith.constant 4 : i32
    %58 = arith.index_cast %c4_i32 : i32 to index
    %c0_35 = arith.constant 0 : index
    %c0_36 = arith.constant 0 : index
    %59 = vector.load %arg8[%58, %c0_35, %c0_36] : memref<8x8x128xf32, #tpu.memory_space<vmem>>, vector<1x8x128xf32>
    %60 = vector.shape_cast %59 : vector<1x8x128xf32> to vector<8x128xf32>
    %cst_37 = arith.constant dense<0.000000e+00> : vector<8x128xf32>
    %61 = tpu.matmul %53, %12, %cst_37 {dimension_numbers = #tpu.dot_dimension_numbers<[1], [0], [0], [1], [0, 0, 1, 1], [], []>} : vector<8x128xbf16>, vector<128x128xbf16>, vector<8x128xf32> -> vector<8x128xf32>
    %62 = arith.addf %60, %61 : vector<8x128xf32>
    %63 = math.tanh %62 : vector<8x128xf32>
    %64 = arith.truncf %63 : vector<8x128xf32> to vector<8x128xbf16>
    %65 = arith.index_cast %c4_i32 : i32 to index
    %c0_38 = arith.constant 0 : index
    %c0_39 = arith.constant 0 : index
    %66 = vector.load %arg6[%65, %c0_38, %c0_39] : memref<8x8x128xbf16, #tpu.memory_space<vmem>>, vector<1x8x128xbf16>
    %67 = vector.shape_cast %66 : vector<1x8x128xbf16> to vector<8x128xbf16>
    %68 = vector.shape_cast %64 : vector<8x128xbf16> to vector<1x8x128xbf16>
    tpu.vector_store %arg6[%65, %c0_38, %c0_39], %68 {strides = array<i32>} : memref<8x8x128xbf16, #tpu.memory_space<vmem>>, vector<1x8x128xbf16>,
    %c5_i32 = arith.constant 5 : i32
    %69 = arith.index_cast %c5_i32 : i32 to index
    %c0_40 = arith.constant 0 : index
    %c0_41 = arith.constant 0 : index
    %70 = vector.load %arg8[%69, %c0_40, %c0_41] : memref<8x8x128xf32, #tpu.memory_space<vmem>>, vector<1x8x128xf32>
    %71 = vector.shape_cast %70 : vector<1x8x128xf32> to vector<8x128xf32>
    %cst_42 = arith.constant dense<0.000000e+00> : vector<8x128xf32>
    %72 = tpu.matmul %64, %12, %cst_42 {dimension_numbers = #tpu.dot_dimension_numbers<[1], [0], [0], [1], [0, 0, 1, 1], [], []>} : vector<8x128xbf16>, vector<128x128xbf16>, vector<8x128xf32> -> vector<8x128xf32>
    %73 = arith.addf %71, %72 : vector<8x128xf32>
    %74 = math.tanh %73 : vector<8x128xf32>
    %75 = arith.truncf %74 : vector<8x128xf32> to vector<8x128xbf16>
    %76 = arith.index_cast %c5_i32 : i32 to index
    %c0_43 = arith.constant 0 : index
    %c0_44 = arith.constant 0 : index
    %77 = vector.load %arg6[%76, %c0_43, %c0_44] : memref<8x8x128xbf16, #tpu.memory_space<vmem>>, vector<1x8x128xbf16>
    %78 = vector.shape_cast %77 : vector<1x8x128xbf16> to vector<8x128xbf16>
    %79 = vector.shape_cast %75 : vector<8x128xbf16> to vector<1x8x128xbf16>
    tpu.vector_store %arg6[%76, %c0_43, %c0_44], %79 {strides = array<i32>} : memref<8x8x128xbf16, #tpu.memory_space<vmem>>, vector<1x8x128xbf16>,
    %c6_i32 = arith.constant 6 : i32
    %80 = arith.index_cast %c6_i32 : i32 to index
    %c0_45 = arith.constant 0 : index
    %c0_46 = arith.constant 0 : index
    %81 = vector.load %arg8[%80, %c0_45, %c0_46] : memref<8x8x128xf32, #tpu.memory_space<vmem>>, vector<1x8x128xf32>
    %82 = vector.shape_cast %81 : vector<1x8x128xf32> to vector<8x128xf32>
    %cst_47 = arith.constant dense<0.000000e+00> : vector<8x128xf32>
    %83 = tpu.matmul %75, %12, %cst_47 {dimension_numbers = #tpu.dot_dimension_numbers<[1], [0], [0], [1], [0, 0, 1, 1], [], []>} : vector<8x128xbf16>, vector<128x128xbf16>, vector<8x128xf32> -> vector<8x128xf32>
    %84 = arith.addf %82, %83 : vector<8x128xf32>
    %85 = math.tanh %84 : vector<8x128xf32>
    %86 = arith.truncf %85 : vector<8x128xf32> to vector<8x128xbf16>
    %87 = arith.index_cast %c6_i32 : i32 to index
    %c0_48 = arith.constant 0 : index
    %c0_49 = arith.constant 0 : index
    %88 = vector.load %arg6[%87, %c0_48, %c0_49] : memref<8x8x128xbf16, #tpu.memory_space<vmem>>, vector<1x8x128xbf16>
    %89 = vector.shape_cast %88 : vector<1x8x128xbf16> to vector<8x128xbf16>
    %90 = vector.shape_cast %86 : vector<8x128xbf16> to vector<1x8x128xbf16>
    tpu.vector_store %arg6[%87, %c0_48, %c0_49], %90 {strides = array<i32>} : memref<8x8x128xbf16, #tpu.memory_space<vmem>>, vector<1x8x128xbf16>,
    %c7_i32 = arith.constant 7 : i32
    %91 = arith.index_cast %c7_i32 : i32 to index
    %c0_50 = arith.constant 0 : index
    %c0_51 = arith.constant 0 : index
    %92 = vector.load %arg8[%91, %c0_50, %c0_51] : memref<8x8x128xf32, #tpu.memory_space<vmem>>, vector<1x8x128xf32>
    %93 = vector.shape_cast %92 : vector<1x8x128xf32> to vector<8x128xf32>
    %cst_52 = arith.constant dense<0.000000e+00> : vector<8x128xf32>
    %94 = tpu.matmul %86, %12, %cst_52 {dimension_numbers = #tpu.dot_dimension_numbers<[1], [0], [0], [1], [0, 0, 1, 1], [], []>} : vector<8x128xbf16>, vector<128x128xbf16>, vector<8x128xf32> -> vector<8x128xf32>
    %95 = arith.addf %93, %94 : vector<8x128xf32>
    %96 = math.tanh %95 : vector<8x128xf32>
    %97 = arith.truncf %96 : vector<8x128xf32> to vector<8x128xbf16>
    %98 = arith.index_cast %c7_i32 : i32 to index
    %c0_53 = arith.constant 0 : index
    %c0_54 = arith.constant 0 : index
    %99 = vector.load %arg6[%98, %c0_53, %c0_54] : memref<8x8x128xbf16, #tpu.memory_space<vmem>>, vector<1x8x128xbf16>
    %100 = vector.shape_cast %99 : vector<1x8x128xbf16> to vector<8x128xbf16>
    %101 = vector.shape_cast %97 : vector<8x128xbf16> to vector<1x8x128xbf16>
    tpu.vector_store %arg6[%98, %c0_53, %c0_54], %101 {strides = array<i32>} : memref<8x8x128xbf16, #tpu.memory_space<vmem>>, vector<1x8x128xbf16>,
    %c8_i32 = arith.constant 8 : i32
    %c0_55 = arith.constant 0 : index
    %c0_56 = arith.constant 0 : index
    %102 = vector.load %arg7[%c0_55, %c0_56] : memref<8x128xbf16, #tpu.memory_space<vmem>>, vector<8x128xbf16>
    tpu.vector_store %arg7[%c0_55, %c0_56], %97 {strides = array<i32>} : memref<8x128xbf16, #tpu.memory_space<vmem>>, vector<8x128xbf16>,
    return
  }
  func.func @transform_0(%arg0: i32) -> (i32, i32) {
    %c0_i32 = arith.constant 0 : i32
    %c0_i32_0 = arith.constant 0 : i32
    %c0_i32_1 = arith.constant 0 : i32
    return %c0_i32, %c0_i32_0 : i32, i32
  }
  func.func @transform_1(%arg0: i32) -> (i32, i32, i32) {
    %c0_i32 = arith.constant 0 : i32
    %c0_i32_0 = arith.constant 0 : i32
    %c0_i32_1 = arith.constant 0 : i32
    return %arg0, %c0_i32, %c0_i32_0 : i32, i32, i32
  }
  func.func @transform_2(%arg0: i32) -> (i32, i32) {
    %c0_i32 = arith.constant 0 : i32
    %c0_i32_0 = arith.constant 0 : i32
    %c0_i32_1 = arith.constant 0 : i32
    return %c0_i32, %c0_i32_0 : i32, i32
  }
  func.func @transform_3(%arg0: i32) -> (i32, i32) {
    %c0_i32 = arith.constant 0 : i32
    %c0_i32_0 = arith.constant 0 : i32
    %c0_i32_1 = arith.constant 0 : i32
    return %c0_i32, %c0_i32_0 : i32, i32
  }
  func.func @transform_4(%arg0: i32) -> (i32, i32) {
    %c0_i32 = arith.constant 0 : i32
    %c0_i32_0 = arith.constant 0 : i32
    %c0_i32_1 = arith.constant 0 : i32
    return %c0_i32, %c0_i32_0 : i32, i32
  }
  func.func @transform_5(%arg0: i32) -> (i32, i32, i32) {
    %c0_i32 = arith.constant 0 : i32
    %c0_i32_0 = arith.constant 0 : i32
    %c0_i32_1 = arith.constant 0 : i32
    return %arg0, %c0_i32, %c0_i32_0 : i32, i32, i32
  }
  func.func @transform_6(%arg0: i32) -> (i32, i32) {
    %c0_i32 = arith.constant 0 : i32
    %c0_i32_0 = arith.constant 0 : i32
    %c0_i32_1 = arith.constant 0 : i32
    return %c0_i32, %c0_i32_0 : i32, i32
  }
}

</mosaic_0001>

<bundles_post_ra>
// kernel: rnn_model_forward.5
= control target key start
LH: loop header
LB: loop body
LE: loop exit
PB: predicated region body
PF: predicated region fallthrough
CT: control target
= control target key end

     0   :  { %s499_s1 = inlined_call_operand.vmem [shape: bf16[128,128], index: 1, kind: input, shape index: {}]   ;;  %s500_s0 = inlined_call_operand.vmem [shape: bf16[64,128], index: 0, kind: input, shape index: {}]   ;;  %s501_s2 = inlined_call_operand.vmem [shape: f32[1,128], index: 2, kind: input, shape index: {}]   ;;  %s502_s3 = inlined_call_operand.vmem [shape: f32[64,128], index: 3, kind: output, shape index: {}]  }
   0x1   :  { %v340_v0 = vld [vmem:[%s499_s1] sm:$0xff]   ;;  %v341_v1 = vld [vmem:[%s499_s1 + $0x8] sm:$0xff]   ;;  %v342_v2 = vld [vmem:[%s499_s1 + $0x10] sm:$0xff]  }
   0x2   :  { %300 = vmatprep.subr.bf16.mxu0 %v340_v0  ;;  %324 = vmatprep.subr.bf16.mxu1 %v340_v0  ;;  %v343_v3 = vld [vmem:[%s499_s1 + $0x18] sm:$0xff]   ;;  %v348_v4 = vld [vmem:[%s500_s0] sm:$0xff]   ;;  %v350_v5 = vld [vmem:[%s500_s0 + $0x10] sm:$0xff]  }
   0x3   :  { %301 = vmatpush3.bf16.msra.mxu0 %v340_v0  ;;  %332 = vmatpush3.bf16.msra.mxu1 %v340_v0  ;;  %v344_v6 = vld [vmem:[%s499_s1 + $0x20] sm:$0xff]   ;;  %v345_v7 = vld [vmem:[%s499_s1 + $0x28] sm:$0xff]   ;;  %v346_v8 = vld [vmem:[%s499_s1 + $0x30] sm:$0xff]  }
   0x4   :  { %302 = vmatprep.subr.bf16.mxu0 %v341_v1  ;;  %325 = vmatprep.subr.bf16.mxu1 %v341_v1  ;;  %v347_v9 = vld [vmem:[%s499_s1 + $0x38] sm:$0xff]   ;;  %v349_v10 = vld [vmem:[%s500_s0 + $0x8] sm:$0xff]   ;;  %v275_v12 = vld [vmem:[%s501_s2] ss:$0 sm:$0xff] }
   0x5   :  { %316 = vmatprep.mubr.bf16.mxu0 %v348_v4  ;;  %320 = vmatprep.mubr.bf16.mxu1 %v350_v5  ;;  %v351_v11 = vld [vmem:[%s500_s0 + $0x18] sm:$0xff]  }
   0x7   :  { %303 = vmatpush3.bf16.msra.mxu0 %v341_v1  ;;  %333 = vmatpush3.bf16.msra.mxu1 %v341_v1 }
   0x8   :  { %304 = vmatprep.subr.bf16.mxu0 %v342_v2  ;;  %326 = vmatprep.subr.bf16.mxu1 %v342_v2 }
   0xb   :  { %305 = vmatpush3.bf16.msra.mxu0 %v342_v2  ;;  %334 = vmatpush3.bf16.msra.mxu1 %v342_v2 }
   0xc   :  { %306 = vmatprep.subr.bf16.mxu0 %v343_v3  ;;  %327 = vmatprep.subr.bf16.mxu1 %v343_v3 }
   0xf   :  { %307 = vmatpush3.bf16.msra.mxu0 %v343_v3  ;;  %335 = vmatpush3.bf16.msra.mxu1 %v343_v3 }
  0x10   :  { %308 = vmatprep.subr.bf16.mxu0 %v344_v6  ;;  %328 = vmatprep.subr.bf16.mxu1 %v344_v6 }
  0x13   :  { %309 = vmatpush3.bf16.msra.mxu0 %v344_v6  ;;  %336 = vmatpush3.bf16.msra.mxu1 %v344_v6 }
  0x14   :  { %310 = vmatprep.subr.bf16.mxu0 %v345_v7  ;;  %329 = vmatprep.subr.bf16.mxu1 %v345_v7 }
  0x17   :  { %311 = vmatpush3.bf16.msra.mxu0 %v345_v7  ;;  %337 = vmatpush3.bf16.msra.mxu1 %v345_v7 }
  0x18   :  { %312 = vmatprep.subr.bf16.mxu0 %v346_v8  ;;  %330 = vmatprep.subr.bf16.mxu1 %v346_v8 }
  0x1b   :  { %313 = vmatpush3.bf16.msra.mxu0 %v346_v8  ;;  %338 = vmatpush3.bf16.msra.mxu1 %v346_v8 }
  0x1c   :  { %314 = vmatprep.subr.bf16.mxu0 %v347_v9  ;;  %331 = vmatprep.subr.bf16.mxu1 %v347_v9 }
  0x1f   :  { %315 = vmatpush3.bf16.msra.mxu0 %v347_v9  ;;  %339 = vmatpush3.bf16.msra.mxu1 %v347_v9 }
  0x22   :  { %317 = vmatmul.mubr.bf16.vlgmr.msra.gmra.mrb[0].mxu0 %v349_v10  ;;  %321 = vmatmul.mubr.bf16.vlgmr.msra.gmra.mrb[0].mxu1 %v351_v11 }
  0xf5   :  { %v318_v13 = vpop.f32.mrb[0].mxu0  ;;  %v322_v14 = vpop.f32.mrb[0].mxu1 }
  0xf6   :  { %v161_v15 = vadd.f32 %v318_v13, %v275_v12  ;;  %v152_v16 = vpop.f32.mrb[1].mxu0  ;;  %v168_v17 = vpop.f32.mrb[1].mxu1  ;;  %v177_v28 = vadd.f32 %v322_v14, %v275_v12 }
  0xf7   :  { %v153_v18 = vadd.f32 %v275_v12, %v152_v16  ;;  %v319_v19 = vpop.f32.mrb[2].mxu0  ;;  %v323_v20 = vpop.f32.mrb[2].mxu1  ;;  %v169_v23 = vadd.f32 %v275_v12, %v168_v17 }
  0xf8   :  { %187 = vmax.xlane.f32.xlu1 %v161_v15  ;;  %v155_v21 = vpop.f32.mrb[3].mxu0  ;;  %v171_v22 = vpop.f32.mrb[3].mxu1  ;;  %v164_v24 = vadd.f32 %v319_v19, %v275_v12  ;;  %v180_v27 = vadd.f32 %v323_v20, %v275_v12 }
  0xf9   :  { %183 = vmax.xlane.f32.xlu0 %v153_v18  ;;  %v172_v25 = vadd.f32 %v275_v12, %v171_v22  ;;  %v156_v26 = vadd.f32 %v275_v12, %v155_v21 }
  0xfc   :  { %189 = vmax.xlane.f32.xlu1 %v164_v24 }
  0xfd   :  { %191 = vmax.xlane.f32.xlu0 %v169_v23 }
 0x100   :  { %193 = vmax.xlane.f32.xlu1 %v172_v25 }
 0x101   :  { %185 = vmax.xlane.f32.xlu0 %v156_v26 }
 0x104   :  { %197 = vmax.xlane.f32.xlu1 %v180_v27 }
 0x105   :  { %195 = vmax.xlane.f32.xlu0 %v177_v28 }
 0x185   :  { %v188_v29 = vpop.xlane.xlu1 %187 }
 0x186   :  { %v443_v30 = vsub.f32 %v161_v15, %v188_v29  ;;  %v184_v31 = vpop.xlane.xlu0 %183 }
 0x187   :  { %v445_v32 = vsub.f32 %v153_v18, %v184_v31 }
 0x188   :  { %v211_v33 = vmul.f32 1.442695, %v443_v30 }
 0x189   :  { %v207_v34 = vmul.f32 1.442695, %v445_v32  ;;  %v190_v35 = vpop.xlane.xlu1 %189 }
 0x18a   :  { %352 = vpow2.f32 %v211_v33  ;;  %v449_v36 = vsub.f32 %v164_v24, %v190_v35  ;;  %v192_v37 = vpop.xlane.xlu0 %191 }
 0x18b   :  { %v451_v38 = vsub.f32 %v169_v23, %v192_v37  ;;  %354 = vpow2.f32 %v207_v34 }
 0x18c   :  { %v213_v39 = vmul.f32 1.442695, %v449_v36 }
 0x18d   :  { %v194_v40 = vpop.xlane.xlu1 %193  ;;  %v215_v41 = vmul.f32 1.442695, %v451_v38 }
 0x18e   :  { %356 = vpow2.f32 %v213_v39  ;;  %v455_v42 = vsub.f32 %v172_v25, %v194_v40  ;;  %v186_v43 = vpop.xlane.xlu0 %185 }
 0x18f   :  { %v457_v44 = vsub.f32 %v156_v26, %v186_v43  ;;  %358 = vpow2.f32 %v215_v41 }
 0x190   :  { %v217_v47 = vmul.f32 1.442695, %v455_v42 }
 0x191   :  { %v209_v45 = vmul.f32 1.442695, %v457_v44  ;;  %v198_v46 = vpop.xlane.xlu1 %197 }
 0x192   :  { %v196_v48 = vpop.xlane.xlu0 %195  ;;  %v461_v49 = vsub.f32 %v180_v27, %v198_v46 }
 0x193   :  { %360 = vpow2.f32 %v209_v45  ;;  %v463_v50 = vsub.f32 %v177_v28, %v196_v48 }
 0x194   :  { %v353_v51 = vpop.eup %352  ;;  %362 = vpow2.f32 %v217_v47  ;;  %v221_v54 = vmul.f32 1.442695, %v461_v49 }
 0x195   :  { %v219_v52 = vmul.f32 1.442695, %v463_v50  ;;  %227 = vadd.xlane.f32.xlu0 %v353_v51  ;;  %v355_v53 = vpop.eup %354 }
 0x197   :  { %364 = vpow2.f32 %v219_v52 }
 0x198   :  { %v357_v55 = vpop.eup %356  ;;  %366 = vpow2.f32 %v221_v54 }
 0x199   :  { %229 = vadd.xlane.f32.xlu1 %v357_v55  ;;  %223 = vadd.xlane.f32.xlu0 %v355_v53  ;;  %v359_v56 = vpop.eup %358 }
 0x19d   :  { %v361_v57 = vpop.eup %360  ;;  %231 = vadd.xlane.f32.xlu0 %v359_v56 }
 0x19e   :  { %225 = vadd.xlane.f32.xlu1 %v361_v57  ;;  %v363_v58 = vpop.eup %362 }
 0x1a1   :  { %v365_v59 = vpop.eup %364 }
 0x1a2   :  { %233 = vadd.xlane.f32.xlu1 %v363_v58  ;;  %235 = vadd.xlane.f32.xlu0 %v365_v59  ;;  %v367_v60 = vpop.eup %366 }
 0x1a6   :  { %237 = vadd.xlane.f32.xlu1 %v367_v60 }
 0x222   :  { %v228_v61 = vpop.xlane.xlu0 %227 }
 0x223   :  { %368 = vlog2.f32 %v228_v61 }
 0x226   :  { %v230_v62 = vpop.xlane.xlu1 %229  ;;  %v224_v63 = vpop.xlane.xlu0 %223 }
 0x227   :  { %370 = vlog2.f32 %v230_v62 }
 0x228   :  { %372 = vlog2.f32 %v224_v63 }
 0x22a   :  { %v232_v0 = vpop.xlane.xlu0 %231 }
 0x22b   :  { %374 = vlog2.f32 %v232_v0  ;;  %v226_v1 = vpop.xlane.xlu1 %225 }
 0x22c   :  { %376 = vlog2.f32 %v226_v1 }
 0x22d   :  { %v369_v2 = vpop.eup %368 }
 0x22e   :  { %v244_v3 = vmul.f32 0.6931472, %v369_v2 }
 0x22f   :  { %v234_v4 = vpop.xlane.xlu1 %233  ;;  %v236_v5 = vpop.xlane.xlu0 %235 }
 0x230   :  { %v257_v6 = vsub.f32 %v443_v30, %v244_v3  ;;  %378 = vlog2.f32 %v234_v4 }
 0x231   :  { %v371_v7 = vpop.eup %370  ;;  %380 = vlog2.f32 %v236_v5 }
 0x232   :  { %v373_v8 = vpop.eup %372  ;;  %265 = vst [vmem:[%s502_s3 + $0x10] sm:$0xff] %v257_v6  ;;  %v246_v9 = vmul.f32 0.6931472, %v371_v7 }
 0x233   :  { %v240_v10 = vmul.f32 0.6931472, %v373_v8  ;;  %v238_v11 = vpop.xlane.xlu1 %237 }
 0x234   :  { %v258_v12 = vsub.f32 %v449_v36, %v246_v9  ;;  %382 = vlog2.f32 %v238_v11 }
 0x235   :  { %v375_v13 = vpop.eup %374  ;;  %v255_v14 = vsub.f32 %v445_v32, %v240_v10 }
 0x236   :  { %v377_v15 = vpop.eup %376  ;;  %266 = vst [vmem:[%s502_s3 + $0x18] sm:$0xff] %v258_v12  ;;  %v248_v16 = vmul.f32 0.6931472, %v375_v13 }
 0x237   :  { %263 = vst [vmem:[%s502_s3] sm:$0xff] %v255_v14  ;;  %v242_v17 = vmul.f32 0.6931472, %v377_v15 }
 0x238   :  { %v259_v18 = vsub.f32 %v451_v38, %v248_v16 }
 0x239   :  { %v256_v19 = vsub.f32 %v457_v44, %v242_v17 }
 0x23a   :  { %v379_v20 = vpop.eup %378  ;;  %267 = vst [vmem:[%s502_s3 + $0x20] sm:$0xff] %v259_v18 }
 0x23b   :  { %v381_v21 = vpop.eup %380  ;;  %264 = vst [vmem:[%s502_s3 + $0x8] sm:$0xff] %v256_v19  ;;  %v250_v22 = vmul.f32 0.6931472, %v379_v20 }
 0x23c   :  { %v252_v23 = vmul.f32 0.6931472, %v381_v21 }
 0x23d   :  { %v260_v24 = vsub.f32 %v455_v42, %v250_v22 }
 0x23e   :  { %v383_v25 = vpop.eup %382  ;;  %v261_v26 = vsub.f32 %v463_v50, %v252_v23 }
 0x23f   :  { %268 = vst [vmem:[%s502_s3 + $0x28] sm:$0xff] %v260_v24  ;;  %v254_v27 = vmul.f32 0.6931472, %v383_v25 }
 0x240   :  { %269 = vst [vmem:[%s502_s3 + $0x30] sm:$0xff] %v261_v26 }
 0x241   :  { %v262_v28 = vsub.f32 %v461_v49, %v254_v27 }
 0x243   :  { %270 = vst [vmem:[%s502_s3 + $0x38] sm:$0xff] %v262_v28 }

// kernel: rnn_model_forward.3
= control target key start
LH: loop header
LB: loop body
LE: loop exit
PB: predicated region body
PF: predicated region fallthrough
CT: control target
= control target key end

     0   :  { %v987_v1 = vmov 0.0   ;;  %vm988_vm0 = vmmov 0   ;;  %s1311_s2 = inlined_call_operand.vmem [shape: bf16[128,128], index: 2, kind: input, shape index: {}]   ;;  %s1312_s4 = inlined_call_operand.vmem [shape: bf16[128,128], index: 4, kind: input, shape index: {}]   ;;  %s1313_s1 = inlined_call_operand.vmem [shape: bf16[8,8,128], index: 1, kind: input, shape index: {}]   ;;  %s1314_s0 = inlined_call_operand.vmem [shape: bf16[8,128], index: 0, kind: input, shape index: {}]   ;;  %s1315_s6 = inlined_call_operand.vmem [shape: bf16[8,128], index: 6, kind: output, shape index: {1}]   ;;  %s1316_s3 = inlined_call_operand.vmem [shape: f32[1,128], index: 3, kind: input, shape index: {}]   ;;  %s1317_s5 = inlined_call_operand.vmem [shape: bf16[8,8,128], index: 5, kind: output, shape index: {0}]  }
   0x1   :  { %v951_v0 = vld [vmem:[%s1311_s2] sm:$0xff]   ;;  %789 = vmatprep.subr.bf16.mxu1 %v987_v1  ;;  %805 = vmatprep.mubr.msk.bf16.mxu1 %vm988_vm0, %v987_v1  ;;  %v953_v3 = vld [vmem:[%s1311_s2 + $0x8] sm:$0xff]   ;;  %v955_v5 = vld [vmem:[%s1311_s2 + $0x10] sm:$0xff]  }
   0x2   :  { %v1033_v2 = vld [vmem:[%s1312_s4] sm:$0xff]   ;;  %765 = vmatprep.subr.bf16.mxu0 %v951_v0  ;;  %v1042_v4 = vld [vmem:[%s1312_s4 + $0x8] sm:$0xff]   ;;  %v1052_v6 = vld [vmem:[%s1312_s4 + $0x10] sm:$0xff]  }
   0x3   :  { %766 = vmatpush3.bf16.msra.mxu0 %v951_v0  ;;  %790 = vmatpush3.bf16.msra.mxu1 %v1033_v2  ;;  %v957_v7 = vld [vmem:[%s1311_s2 + $0x18] sm:$0xff]   ;;  %v959_v9 = vld [vmem:[%s1311_s2 + $0x20] sm:$0xff]   ;;  %v961_v11 = vld [vmem:[%s1311_s2 + $0x28] sm:$0xff]  }
   0x4   :  { %767 = vmatprep.subr.bf16.mxu0 %v953_v3  ;;  %791 = vmatprep.subr.bf16.mxu1 %v987_v1  ;;  %v1062_v8 = vld [vmem:[%s1312_s4 + $0x18] sm:$0xff]   ;;  %v1071_v10 = vld [vmem:[%s1312_s4 + $0x20] sm:$0xff]   ;;  %v1088_v14 = vld [vmem:[%s1312_s4 + $0x28] sm:$0xff]  }
   0x5   :  { %v967_v12 = vld [vmem:[%s1313_s1] sm:$0xff]   ;;  %v963_v15 = vld [vmem:[%s1311_s2 + $0x30] sm:$0xff]   ;;  %v965_v17 = vld [vmem:[%s1311_s2 + $0x38] sm:$0xff]  }
   0x6   :  { %781 = vmatprep.mubr.bf16.mxu0 %v967_v12  ;;  %v27_v13 = vld [vmem:[%s1314_s0] sm:$0xf]  ;;  %v1101_v16 = vld [vmem:[%s1312_s4 + $0x30] sm:$0xff]   ;;  %v1111_v18 = vld [vmem:[%s1312_s4 + $0x38] sm:$0xff]  }
   0x7   :  { %768 = vmatpush3.bf16.msra.mxu0 %v953_v3  ;;  %792 = vmatpush3.bf16.msra.mxu1 %v1042_v4  ;;  %28 = vst [vmem:[%s1315_s6] sm:$0xf] %v27_v13  ;;  %v968_v19 = vld [vmem:[%s1313_s1 + $0x8] sm:$0xff]   ;;  %v969_v21 = vld [vmem:[%s1313_s1 + $0x10] sm:$0xff]   ;;  %v970_v22 = vld [vmem:[%s1313_s1 + $0x18] sm:$0xff]  }
   0x8   :  { %769 = vmatprep.subr.bf16.mxu0 %v955_v5  ;;  %793 = vmatprep.subr.bf16.mxu1 %v987_v1  ;;  %v1168_v23 = vld [vmem:[%s1316_s3] ss:$0 sm:$0xff] }
   0xb   :  { %770 = vmatpush3.bf16.msra.mxu0 %v955_v5  ;;  %794 = vmatpush3.bf16.msra.mxu1 %v1052_v6 }
   0xc   :  { %771 = vmatprep.subr.bf16.mxu0 %v957_v7  ;;  %795 = vmatprep.subr.bf16.mxu1 %v987_v1 }
   0xe   :  { %v221_v20 = vld [vmem:[%s1315_s6] sm:$0xf] }
   0xf   :  { %772 = vmatpush3.bf16.msra.mxu0 %v957_v7  ;;  %796 = vmatpush3.bf16.msra.mxu1 %v1062_v8 }
  0x10   :  { %773 = vmatprep.subr.bf16.mxu0 %v959_v9  ;;  %797 = vmatprep.subr.bf16.mxu1 %v987_v1 }
  0x13   :  { %774 = vmatpush3.bf16.msra.mxu0 %v959_v9  ;;  %798 = vmatpush3.bf16.msra.mxu1 %v1071_v10 }
  0x14   :  { %775 = vmatprep.subr.bf16.mxu0 %v961_v11  ;;  %799 = vmatprep.subr.bf16.mxu1 %v987_v1 }
  0x17   :  { %776 = vmatpush3.bf16.msra.mxu0 %v961_v11  ;;  %800 = vmatpush3.bf16.msra.mxu1 %v1088_v14 }
  0x18   :  { %777 = vmatprep.subr.bf16.mxu0 %v963_v15  ;;  %801 = vmatprep.subr.bf16.mxu1 %v987_v1 }
  0x1b   :  { %778 = vmatpush3.bf16.msra.mxu0 %v963_v15  ;;  %802 = vmatpush3.bf16.msra.mxu1 %v1101_v16 }
  0x1c   :  { %779 = vmatprep.subr.bf16.mxu0 %v965_v17  ;;  %803 = vmatprep.subr.bf16.mxu1 %v987_v1 }
  0x1f   :  { %780 = vmatpush3.bf16.msra.mxu0 %v965_v17  ;;  %804 = vmatpush3.bf16.msra.mxu1 %v1111_v18 }
  0x20   :  { %809 = vmatprep.subr.bf16.mxu0 %v987_v1  ;;  %829 = vmatprep.subr.bf16.mxu1 %v987_v1 }
  0x22   :  { %782 = vmatmul.mubr.bf16.vlgmr.msra.gmra.mrb[0].mxu0 %v968_v19  ;;  %806 = vmatmul.mubr.bf16.vlgmr.msra.gmra.mrb[0].mxu1 %v221_v20 }
  0x23   :  { %810 = vmatpush3.bf16.msra.mxu0 %v1033_v2  ;;  %830 = vmatpush3.bf16.msra.mxu1 %v1033_v2 }
  0x24   :  { %811 = vmatprep.subr.bf16.mxu0 %v987_v1  ;;  %831 = vmatprep.subr.bf16.mxu1 %v987_v1 }
  0x25   :  { %845 = vmatprep.mubr.msk.bf16.mxu1 %vm988_vm0, %v987_v1  ;;  %785 = vmatprep.mubr.bf16.mxu0 %v969_v21 }
  0x27   :  { %812 = vmatpush3.bf16.msra.mxu0 %v1042_v4  ;;  %832 = vmatpush3.bf16.msra.mxu1 %v1042_v4 }
  0x28   :  { %813 = vmatprep.subr.bf16.mxu0 %v987_v1  ;;  %833 = vmatprep.subr.bf16.mxu1 %v987_v1 }
  0x2a   :  { %786 = vmatmul.mubr.bf16.gmra.mrb[4].mxu0 %v970_v22 }
  0x2b   :  { %814 = vmatpush3.bf16.msra.mxu0 %v1052_v6  ;;  %834 = vmatpush3.bf16.msra.mxu1 %v1052_v6 }
  0x2c   :  { %815 = vmatprep.subr.bf16.mxu0 %v987_v1  ;;  %835 = vmatprep.subr.bf16.mxu1 %v987_v1 }
  0x2d   :  { %825 = vmatprep.mubr.msk.bf16.mxu0 %vm988_vm0, %v987_v1 }
  0x2f   :  { %816 = vmatpush3.bf16.msra.mxu0 %v1062_v8  ;;  %836 = vmatpush3.bf16.msra.mxu1 %v1062_v8 }
  0x30   :  { %817 = vmatprep.subr.bf16.mxu0 %v987_v1  ;;  %837 = vmatprep.subr.bf16.mxu1 %v987_v1 }
  0x33   :  { %818 = vmatpush3.bf16.msra.mxu0 %v1071_v10  ;;  %838 = vmatpush3.bf16.msra.mxu1 %v1071_v10 }
  0x34   :  { %819 = vmatprep.subr.bf16.mxu0 %v987_v1  ;;  %839 = vmatprep.subr.bf16.mxu1 %v987_v1 }
  0x37   :  { %820 = vmatpush3.bf16.msra.mxu0 %v1088_v14  ;;  %840 = vmatpush3.bf16.msra.mxu1 %v1088_v14 }
  0x38   :  { %821 = vmatprep.subr.bf16.mxu0 %v987_v1  ;;  %841 = vmatprep.subr.bf16.mxu1 %v987_v1 }
  0x3b   :  { %822 = vmatpush3.bf16.msra.mxu0 %v1101_v16  ;;  %842 = vmatpush3.bf16.msra.mxu1 %v1101_v16 }
  0x3c   :  { %823 = vmatprep.subr.bf16.mxu0 %v987_v1  ;;  %843 = vmatprep.subr.bf16.mxu1 %v987_v1 }
  0x3f   :  { %824 = vmatpush3.bf16.msra.mxu0 %v1111_v18  ;;  %844 = vmatpush3.bf16.msra.mxu1 %v1111_v18 }
  0x40   :  { %849 = vmatprep.subr.bf16.mxu0 %v987_v1  ;;  %869 = vmatprep.subr.bf16.mxu1 %v987_v1 }
  0xf5   :  { %v1170_v24 = vpop.f32.mrb[0].mxu0  ;;  %v305_v25 = vpop.f32.mrb[0].mxu1 }
  0xf6   :  { %v166_v26 = vpop.f32.mrb[1].mxu0  ;;  %v807_v27 = vpop.f32.mrb[1].mxu1  ;;  %v175_v48 = vadd.f32 %v1170_v24, %v1168_v23 }
  0xf7   :  { %v167_v28 = vadd.f32 %v1168_v23, %v166_v26  ;;  %v1173_v29 = vpop.f32.mrb[2].mxu0  ;;  %v308_v30 = vpop.f32.mrb[2].mxu1 }
  0xf8   :  { %v169_v31 = vpop.f32.mrb[3].mxu0  ;;  %v808_v32 = vpop.f32.mrb[3].mxu1  ;;  %v178_v56 = vadd.f32 %v1173_v29, %v1168_v23 }
  0xf9   :  { %v311_v33 = vadd.f32 %v305_v25, %v167_v28  ;;  %v170_v40 = vadd.f32 %v1168_v23, %v169_v31 }
  0xfb   :  { %971 = vtanh.f32 %v311_v33 }
  0xfd   :  { %v1196_v36 = vpop.f32.mrb[4].mxu0 }
  0xfe   :  { %v1198_v37 = vpop.f32.mrb[5].mxu0 }
  0xff   :  { %v1200_v38 = vpop.f32.mrb[6].mxu0  ;;  %v183_v0 = vadd.f32 %v1168_v23, %v1198_v37 }
 0x100   :  { %v1202_v39 = vpop.f32.mrb[7].mxu0  ;;  %v194_v25 = vadd.f32 %v1200_v38, %v1168_v23 }
 0x105   :  { %v972_v34 = vpop.eup %971 }
 0x106   :  { %v313_v35 = vpack.c.bf16 %v972_v34, %v972_v34 }
 0x108   :  { %314 = vst [vmem:[%s1317_s5] sm:$0xf] %v313_v35  ;;  %826 = vmatmul.mubr.bf16.vlgmr.msra.gmra.mrb[8].mxu0 %v313_v35 }
 0x109   :  { %850 = vmatpush3.bf16.msra.mxu0 %v1033_v2  ;;  %865 = vmatprep.mubr.msk.bf16.mxu0 %vm988_vm0, %v987_v1 }
 0x10a   :  { %851 = vmatprep.subr.bf16.mxu0 %v987_v1 }
 0x10d   :  { %852 = vmatpush3.bf16.msra.mxu0 %v1042_v4 }
 0x10e   :  { %853 = vmatprep.subr.bf16.mxu0 %v987_v1 }
 0x111   :  { %854 = vmatpush3.bf16.msra.mxu0 %v1052_v6 }
 0x112   :  { %855 = vmatprep.subr.bf16.mxu0 %v987_v1 }
 0x115   :  { %856 = vmatpush3.bf16.msra.mxu0 %v1062_v8 }
 0x116   :  { %857 = vmatprep.subr.bf16.mxu0 %v987_v1 }
 0x119   :  { %858 = vmatpush3.bf16.msra.mxu0 %v1071_v10 }
 0x11a   :  { %859 = vmatprep.subr.bf16.mxu0 %v987_v1 }
 0x11d   :  { %860 = vmatpush3.bf16.msra.mxu0 %v1088_v14 }
 0x11e   :  { %861 = vmatprep.subr.bf16.mxu0 %v987_v1 }
 0x121   :  { %862 = vmatpush3.bf16.msra.mxu0 %v1101_v16 }
 0x122   :  { %863 = vmatprep.subr.bf16.mxu0 %v987_v1 }
 0x125   :  { %864 = vmatpush3.bf16.msra.mxu0 %v1111_v18 }
 0x126   :  { %889 = vmatprep.subr.bf16.mxu0 %v987_v1 }
 0x1db   :  { %v351_v41 = vpop.f32.mrb[8].mxu0 }
 0x1dc   :  { %v357_v42 = vadd.f32 %v351_v41, %v170_v40  ;;  %v827_v43 = vpop.f32.mrb[9].mxu0 }
 0x1dd   :  { %v354_v44 = vpop.f32.mrb[10].mxu0 }
 0x1de   :  { %973 = vtanh.f32 %v357_v42  ;;  %v828_v45 = vpop.f32.mrb[11].mxu0 }
 0x1e8   :  { %v974_v46 = vpop.eup %973 }
 0x1e9   :  { %v359_v47 = vpack.c.bf16 %v974_v46, %v974_v46 }
 0x1eb   :  { %674 = vst [vmem:[%s1317_s5 + $0x4] sm:$0xf] %v359_v47  ;;  %846 = vmatmul.mubr.bf16.vlgmr.msra.gmra.mrb[4].mxu1 %v359_v47 }
 0x1ec   :  { %870 = vmatpush3.bf16.msra.mxu1 %v1033_v2  ;;  %885 = vmatprep.mubr.msk.bf16.mxu1 %vm988_vm0, %v987_v1 }
 0x1ed   :  { %871 = vmatprep.subr.bf16.mxu1 %v987_v1 }
 0x1f0   :  { %872 = vmatpush3.bf16.msra.mxu1 %v1042_v4 }
 0x1f1   :  { %873 = vmatprep.subr.bf16.mxu1 %v987_v1 }
 0x1f4   :  { %874 = vmatpush3.bf16.msra.mxu1 %v1052_v6 }
 0x1f5   :  { %875 = vmatprep.subr.bf16.mxu1 %v987_v1 }
 0x1f8   :  { %876 = vmatpush3.bf16.msra.mxu1 %v1062_v8 }
 0x1f9   :  { %877 = vmatprep.subr.bf16.mxu1 %v987_v1 }
 0x1fc   :  { %878 = vmatpush3.bf16.msra.mxu1 %v1071_v10 }
 0x1fd   :  { %879 = vmatprep.subr.bf16.mxu1 %v987_v1 }
 0x200   :  { %880 = vmatpush3.bf16.msra.mxu1 %v1088_v14 }
 0x201   :  { %881 = vmatprep.subr.bf16.mxu1 %v987_v1 }
 0x204   :  { %882 = vmatpush3.bf16.msra.mxu1 %v1101_v16 }
 0x205   :  { %883 = vmatprep.subr.bf16.mxu1 %v987_v1 }
 0x208   :  { %884 = vmatpush3.bf16.msra.mxu1 %v1111_v18 }
 0x209   :  { %909 = vmatprep.subr.bf16.mxu1 %v987_v1 }
 0x2be   :  { %v398_v49 = vpop.f32.mrb[4].mxu1 }
 0x2bf   :  { %v404_v50 = vadd.f32 %v398_v49, %v175_v48  ;;  %v847_v51 = vpop.f32.mrb[5].mxu1 }
 0x2c0   :  { %v401_v52 = vpop.f32.mrb[6].mxu1 }
 0x2c1   :  { %975 = vtanh.f32 %v404_v50  ;;  %v848_v53 = vpop.f32.mrb[7].mxu1 }
 0x2cb   :  { %v976_v54 = vpop.eup %975 }
 0x2cc   :  { %v406_v55 = vpack.c.bf16 %v976_v54, %v976_v54 }
 0x2ce   :  { %675 = vst [vmem:[%s1317_s5 + $0x8] sm:$0xf] %v406_v55  ;;  %866 = vmatmul.mubr.bf16.vlgmr.msra.gmra.mrb[12].mxu0 %v406_v55 }
 0x2cf   :  { %890 = vmatpush3.bf16.msra.mxu0 %v1033_v2  ;;  %905 = vmatprep.mubr.msk.bf16.mxu0 %vm988_vm0, %v987_v1 }
 0x2d0   :  { %891 = vmatprep.subr.bf16.mxu0 %v987_v1 }
 0x2d3   :  { %892 = vmatpush3.bf16.msra.mxu0 %v1042_v4 }
 0x2d4   :  { %893 = vmatprep.subr.bf16.mxu0 %v987_v1 }
 0x2d7   :  { %894 = vmatpush3.bf16.msra.mxu0 %v1052_v6 }
 0x2d8   :  { %895 = vmatprep.subr.bf16.mxu0 %v987_v1 }
 0x2db   :  { %896 = vmatpush3.bf16.msra.mxu0 %v1062_v8 }
 0x2dc   :  { %897 = vmatprep.subr.bf16.mxu0 %v987_v1 }
 0x2df   :  { %898 = vmatpush3.bf16.msra.mxu0 %v1071_v10 }
 0x2e0   :  { %899 = vmatprep.subr.bf16.mxu0 %v987_v1 }
 0x2e3   :  { %900 = vmatpush3.bf16.msra.mxu0 %v1088_v14 }
 0x2e4   :  { %901 = vmatprep.subr.bf16.mxu0 %v987_v1 }
 0x2e7   :  { %902 = vmatpush3.bf16.msra.mxu0 %v1101_v16 }
 0x2e8   :  { %903 = vmatprep.subr.bf16.mxu0 %v987_v1 }
 0x2eb   :  { %904 = vmatpush3.bf16.msra.mxu0 %v1111_v18 }
 0x2ec   :  { %929 = vmatprep.subr.bf16.mxu0 %v987_v1 }
 0x3a1   :  { %v445_v57 = vpop.f32.mrb[12].mxu0 }
 0x3a2   :  { %v451_v58 = vadd.f32 %v445_v57, %v178_v56  ;;  %v867_v59 = vpop.f32.mrb[13].mxu0 }
 0x3a3   :  { %v448_v60 = vpop.f32.mrb[14].mxu0 }
 0x3a4   :  { %977 = vtanh.f32 %v451_v58  ;;  %v868_v61 = vpop.f32.mrb[15].mxu0 }
 0x3ae   :  { %v978_v62 = vpop.eup %977 }
 0x3af   :  { %v453_v63 = vpack.c.bf16 %v978_v62, %v978_v62 }
 0x3b1   :  { %676 = vst [vmem:[%s1317_s5 + $0xc] sm:$0xf] %v453_v63  ;;  %886 = vmatmul.mubr.bf16.vlgmr.msra.gmra.mrb[8].mxu1 %v453_v63 }
 0x3b2   :  { %910 = vmatpush3.bf16.msra.mxu1 %v1033_v2  ;;  %925 = vmatprep.mubr.msk.bf16.mxu1 %vm988_vm0, %v987_v1 }
 0x3b3   :  { %911 = vmatprep.subr.bf16.mxu1 %v987_v1 }
 0x3b6   :  { %912 = vmatpush3.bf16.msra.mxu1 %v1042_v4 }
 0x3b7   :  { %913 = vmatprep.subr.bf16.mxu1 %v987_v1 }
 0x3ba   :  { %914 = vmatpush3.bf16.msra.mxu1 %v1052_v6 }
 0x3bb   :  { %915 = vmatprep.subr.bf16.mxu1 %v987_v1 }
 0x3be   :  { %916 = vmatpush3.bf16.msra.mxu1 %v1062_v8 }
 0x3bf   :  { %917 = vmatprep.subr.bf16.mxu1 %v987_v1 }
 0x3c2   :  { %918 = vmatpush3.bf16.msra.mxu1 %v1071_v10 }
 0x3c3   :  { %919 = vmatprep.subr.bf16.mxu1 %v987_v1 }
 0x3c6   :  { %920 = vmatpush3.bf16.msra.mxu1 %v1088_v14 }
 0x3c7   :  { %921 = vmatprep.subr.bf16.mxu1 %v987_v1 }
 0x3ca   :  { %922 = vmatpush3.bf16.msra.mxu1 %v1101_v16 }
 0x3cb   :  { %923 = vmatprep.subr.bf16.mxu1 %v987_v1 }
 0x3ce   :  { %924 = vmatpush3.bf16.msra.mxu1 %v1111_v18 }
 0x484   :  { %v492_v3 = vpop.f32.mrb[8].mxu1 }
 0x485   :  { %v498_v5 = vadd.f32 %v492_v3, %v183_v0  ;;  %v887_v7 = vpop.f32.mrb[9].mxu1 }
 0x486   :  { %v495_v9 = vpop.f32.mrb[10].mxu1 }
 0x487   :  { %979 = vtanh.f32 %v498_v5  ;;  %v888_v11 = vpop.f32.mrb[11].mxu1 }
 0x491   :  { %v980_v12 = vpop.eup %979 }
 0x492   :  { %v500_v13 = vpack.c.bf16 %v980_v12, %v980_v12 }
 0x494   :  { %677 = vst [vmem:[%s1317_s5 + $0x10] sm:$0xf] %v500_v13  ;;  %906 = vmatmul.mubr.bf16.vlgmr.msra.gmra.mrb[16].mxu0 %v500_v13 }
 0x495   :  { %930 = vmatpush3.bf16.msra.mxu0 %v1033_v2  ;;  %945 = vmatprep.mubr.msk.bf16.mxu0 %vm988_vm0, %v987_v1  ;;  %v186_v2 = vadd.f32 %v1168_v23, %v1202_v39 }
 0x496   :  { %931 = vmatprep.subr.bf16.mxu0 %v987_v1 }
 0x499   :  { %932 = vmatpush3.bf16.msra.mxu0 %v1042_v4 }
 0x49a   :  { %933 = vmatprep.subr.bf16.mxu0 %v987_v1 }
 0x49d   :  { %934 = vmatpush3.bf16.msra.mxu0 %v1052_v6 }
 0x49e   :  { %935 = vmatprep.subr.bf16.mxu0 %v987_v1 }
 0x4a1   :  { %936 = vmatpush3.bf16.msra.mxu0 %v1062_v8 }
 0x4a2   :  { %937 = vmatprep.subr.bf16.mxu0 %v987_v1 }
 0x4a5   :  { %938 = vmatpush3.bf16.msra.mxu0 %v1071_v10 }
 0x4a6   :  { %939 = vmatprep.subr.bf16.mxu0 %v987_v1 }
 0x4a9   :  { %940 = vmatpush3.bf16.msra.mxu0 %v1088_v14 }
 0x4aa   :  { %941 = vmatprep.subr.bf16.mxu0 %v987_v1 }
 0x4ad   :  { %942 = vmatpush3.bf16.msra.mxu0 %v1101_v16 }
 0x4ae   :  { %943 = vmatprep.subr.bf16.mxu0 %v987_v1  ;;  %v191_v1 = vadd.f32 %v1196_v36, %v1168_v23 }
 0x4b1   :  { %944 = vmatpush3.bf16.msra.mxu0 %v1111_v18 }
 0x567   :  { %v539_v4 = vpop.f32.mrb[16].mxu0 }
 0x568   :  { %v545_v6 = vadd.f32 %v539_v4, %v186_v2  ;;  %v907_v8 = vpop.f32.mrb[17].mxu0 }
 0x569   :  { %v542_v15 = vpop.f32.mrb[18].mxu0 }
 0x56a   :  { %981 = vtanh.f32 %v545_v6  ;;  %v908_v10 = vpop.f32.mrb[19].mxu0 }
 0x574   :  { %v982_v17 = vpop.eup %981 }
 0x575   :  { %v547_v19 = vpack.c.bf16 %v982_v17, %v982_v17 }
 0x577   :  { %678 = vst [vmem:[%s1317_s5 + $0x14] sm:$0xf] %v547_v19  ;;  %926 = vmatmul.mubr.bf16.vlgmr.msra.gmra.mrb[12].mxu1 %v547_v19 }
 0x64a   :  { %v586_v14 = vpop.f32.mrb[12].mxu1 }
 0x64b   :  { %v592_v16 = vadd.f32 %v586_v14, %v191_v1  ;;  %v927_v18 = vpop.f32.mrb[13].mxu1 }
 0x64c   :  { %v589_v20 = vpop.f32.mrb[14].mxu1 }
 0x64d   :  { %983 = vtanh.f32 %v592_v16  ;;  %v928_v21 = vpop.f32.mrb[15].mxu1 }
 0x657   :  { %v984_v22 = vpop.eup %983 }
 0x658   :  { %v594_v24 = vpack.c.bf16 %v984_v22, %v984_v22 }
 0x65a   :  { %679 = vst [vmem:[%s1317_s5 + $0x18] sm:$0xf] %v594_v24  ;;  %946 = vmatmul.mubr.bf16.vlgmr.msra.gmra.mrb[20].mxu0 %v594_v24 }
 0x72d   :  { %v633_v26 = vpop.f32.mrb[20].mxu0 }
 0x72e   :  { %v639_v27 = vadd.f32 %v633_v26, %v194_v25  ;;  %v947_v28 = vpop.f32.mrb[21].mxu0 }
 0x72f   :  { %v636_v29 = vpop.f32.mrb[22].mxu0 }
 0x730   :  { %985 = vtanh.f32 %v639_v27  ;;  %v948_v30 = vpop.f32.mrb[23].mxu0 }
 0x73a   :  { %v986_v31 = vpop.eup %985 }
 0x73b   :  { %v641_v32 = vpack.c.bf16 %v986_v31, %v986_v31 }
 0x73d   :  { %680 = vst [vmem:[%s1317_s5 + $0x1c] sm:$0xf] %v641_v32  ;;  %644 = vst [vmem:[%s1315_s6] sm:$0xf] %v641_v32 }

</bundles_post_ra>
